<compile_context>
chip_gen: v7x
topology: tpu7x:2x2x1
jax: 0.10.0
libtpu: 0.0.40
codegen_flags: <defaults>
</compile_context>

<pallas_src>
import functools

import jax
import jax.numpy as jnp
from jax.experimental import pallas as pl
from jax.experimental.pallas import tpu as pltpu

_H_ACTOR = 200
_H_CRITIC = 100


def _round_up(n, m):
    return ((n + m - 1) // m) * m


def actor_critic_kernel(x_ref, w1_ref, b1_ref, w2_ref, b2_ref, out_ref,
                        *, out_channels):
    x = x_ref[...]                                          # (TB, K_pad)

    # Fused layer 1: [actor | critic] hidden, relu6 applies to both branches.
    h = jnp.dot(x, w1_ref[...], preferred_element_type=jnp.float32) + b1_ref[...]
    h = jnp.clip(h, 0.0, 6.0)                               # F.relu6 (padded cols stay 0)

    # Fused layer 2: block-diagonal [Wmu | Wsg | Wv] -> (TB, 128) slab.
    z = jnp.dot(h, w2_ref[...], preferred_element_type=jnp.float32) + b2_ref[...]

    # Per-column-range nonlinearities on the lane-dense slab:
    #   cols [0, out)       -> mu    = 2*tanh(.)
    #   cols [out, 2*out)   -> sigma = softplus(.) + 0.001
    #   cols [2*out, ...)   -> values (identity; padding stays 0)
    col = jax.lax.broadcasted_iota(jnp.int32, z.shape, 1)
    mu_part = 2.0 * jnp.tanh(z)                             # EUP
    sg_part = jnp.logaddexp(0.0, z) + 0.001                 # softplus, EUP
    out_ref[...] = jnp.where(col < out_channels, mu_part,
                             jnp.where(col < 2 * out_channels, sg_part, z))


def actor_critic_forward(x, params, *, tile_b=256):
    """x: (B, in_channels) float32. params: dict of per-layer weights/biases.

    Returns (mu, sigma, values) matching the PyTorch module's forward().
    """
    B, fin = x.shape
    out_channels = params["wmu"].shape[1]

    # Padded sizes (zero padding -> math unchanged).
    ha_pad = _round_up(_H_ACTOR, 128)        # 256
    hc_pad = _round_up(_H_CRITIC, 128)       # 128
    h_pad = ha_pad + hc_pad                  # 384
    k_pad = _round_up(fin, 8)                # 8
    out_slab = 128
    assert 2 * out_channels + 1 <= out_slab, "output slab too small"

    f32 = jnp.float32
    # --- Fused, padded layer-1 weights: [Wa | 0 | Wc | 0] ---
    w1 = jnp.zeros((k_pad, h_pad), f32)
    w1 = w1.at[:fin, :_H_ACTOR].set(params["wa"].astype(f32))
    w1 = w1.at[:fin, ha_pad:ha_pad + _H_CRITIC].set(params["wc"].astype(f32))
    b1 = jnp.zeros((1, h_pad), f32)
    b1 = b1.at[:, :_H_ACTOR].set(params["ba"].reshape(1, _H_ACTOR).astype(f32))
    b1 = b1.at[:, ha_pad:ha_pad + _H_CRITIC].set(
        params["bc"].reshape(1, _H_CRITIC).astype(f32))

    # --- Fused, padded layer-2 weights (block diagonal) ---
    w2 = jnp.zeros((h_pad, out_slab), f32)
    w2 = w2.at[:_H_ACTOR, :out_channels].set(params["wmu"].astype(f32))
    w2 = w2.at[:_H_ACTOR, out_channels:2 * out_channels].set(params["wsg"].astype(f32))
    w2 = w2.at[ha_pad:ha_pad + _H_CRITIC,
               2 * out_channels:2 * out_channels + 1].set(params["wv"].astype(f32))
    b2 = jnp.zeros((1, out_slab), f32)
    b2 = b2.at[:, :out_channels].set(params["bmu"].reshape(1, -1).astype(f32))
    b2 = b2.at[:, out_channels:2 * out_channels].set(
        params["bsg"].reshape(1, -1).astype(f32))
    b2 = b2.at[:, 2 * out_channels:2 * out_channels + 1].set(
        params["bv"].reshape(1, -1).astype(f32))

    # --- Pad x to (B_pad, k_pad); batch tiled on a "parallel" grid axis ---
    tb = max(8, min(_round_up(tile_b, 8), _round_up(B, 8)))
    b_pad = _round_up(B, tb)
    x_pad = jnp.zeros((b_pad, k_pad), f32).at[:B, :fin].set(x.astype(f32))

    # TODO(synk): for very large batches on v6e/v7x, store x/W1/W2 in bfloat16
    # (keep f32 accumulation) to halve MXU passes and input DMA bytes.
    out = pl.pallas_call(
        functools.partial(actor_critic_kernel, out_channels=out_channels),
        out_shape=jax.ShapeDtypeStruct((b_pad, out_slab), f32),
        grid=(b_pad // tb,),
        in_specs=[
            pl.BlockSpec((tb, k_pad), lambda i: (i, 0)),          # x tile
            pl.BlockSpec((k_pad, h_pad), lambda i: (0, 0)),       # W1 (resident)
            pl.BlockSpec((1, h_pad), lambda i: (0, 0)),           # b1
            pl.BlockSpec((h_pad, out_slab), lambda i: (0, 0)),    # W2 (resident)
            pl.BlockSpec((1, out_slab), lambda i: (0, 0)),        # b2
        ],
        out_specs=pl.BlockSpec((tb, out_slab), lambda i: (i, 0)),
        compiler_params=pltpu.CompilerParams(
            dimension_semantics=("parallel",)),
    )(x_pad, w1, b1, w2, b2)

    mu = out[:B, :out_channels]
    sigma = out[:B, out_channels:2 * out_channels]
    values = out[:B, 2 * out_channels:2 * out_channels + 1]
    return mu, sigma, values


def init_params(key, in_channels=3, out_channels=1):
    """Matches the PyTorch init: Linear weights ~ N(0, 0.1), biases = 0.
    Weights stored as (in_features, out_features) so y = x @ W + b."""
    ks = jax.random.split(key, 5)
    std = 0.1

    def lin(k, fan_in, fan_out):
        w = std * jax.random.normal(k, (fan_in, fan_out), dtype=jnp.float32)
        b = jnp.zeros((1, fan_out), dtype=jnp.float32)
        return w, b

    wa, ba = lin(ks[0], in_channels, _H_ACTOR)     # actor_linear
    wmu, bmu = lin(ks[1], _H_ACTOR, out_channels)  # actor_mu
    wsg, bsg = lin(ks[2], _H_ACTOR, out_channels)  # sigma
    wc, bc = lin(ks[3], in_channels, _H_CRITIC)    # critic_lieanr
    wv, bv = lin(ks[4], _H_CRITIC, 1)              # v
    return dict(wa=wa, ba=ba, wmu=wmu, bmu=bmu, wsg=wsg, bsg=bsg,
                wc=wc, bc=bc, wv=wv, bv=bv)


if __name__ == "__main__":
    key = jax.random.PRNGKey(0)
    k_params, k_x = jax.random.split(key)

    in_channels = 3
    out_channels = 1
    batch = 8

    params = init_params(k_params, in_channels, out_channels)
    x = jax.random.normal(k_x, (batch, in_channels), dtype=jnp.float32)

    mu, sigma, values = actor_critic_forward(x, params)
    jax.block_until_ready((mu, sigma, values))

    # pure-JAX reference check (unfused weights)
    def ref(x, p):
        actor = jnp.clip(x @ p["wa"] + p["ba"], 0.0, 6.0)
        mu = 2.0 * jnp.tanh(actor @ p["wmu"] + p["bmu"])
        sigma = jax.nn.softplus(actor @ p["wsg"] + p["bsg"]) + 0.001
        critic = jnp.clip(x @ p["wc"] + p["bc"], 0.0, 6.0)
        values = critic @ p["wv"] + p["bv"]
        return mu, sigma, values

    rmu, rsigma, rvalues = ref(x, params)
    assert mu.shape == (batch, out_channels)
    assert sigma.shape == (batch, out_channels)
    assert values.shape == (batch, 1)
    assert jnp.allclose(mu, rmu, atol=1e-5)
    assert jnp.allclose(sigma, rsigma, atol=1e-5)
    assert jnp.allclose(values, rvalues, atol=1e-5)

    print("KERNEL_OK")
</pallas_src>

<mosaic_0001>
module attributes {stable_mosaic.version = 11 : i64} {
  func.func @actor_critic_kernel(%arg0: i32, %arg1: memref<8x8xf32, #tpu.memory_space<vmem>>, %arg2: memref<8x384xf32, #tpu.memory_space<vmem>>, %arg3: memref<1x384xf32, #tpu.memory_space<vmem>>, %arg4: memref<384x128xf32, #tpu.memory_space<vmem>>, %arg5: memref<1x128xf32, #tpu.memory_space<vmem>>, %arg6: memref<8x128xf32, #tpu.memory_space<vmem>>) attributes {dimension_semantics = [#tpu.dimension_semantics<parallel>], iteration_bounds = array<i64: 1>, scalar_prefetch = 0 : i64, scratch_operands = 0 : i64, tpu.core_type = #tpu.core_type<tc>, window_params = [{transform_indices = @transform_0, window_bounds = array<i64: 8, 8>}, {pipeline_mode = #tpu.pipeline_mode<synchronous>, transform_indices = @transform_1, window_bounds = array<i64: 8, 384>}, {pipeline_mode = #tpu.pipeline_mode<synchronous>, transform_indices = @transform_2, window_bounds = array<i64: 1, 384>}, {pipeline_mode = #tpu.pipeline_mode<synchronous>, transform_indices = @transform_3, window_bounds = array<i64: 384, 128>}, {pipeline_mode = #tpu.pipeline_mode<synchronous>, transform_indices = @transform_4, window_bounds = array<i64: 1, 128>}, {transform_indices = @transform_5, window_bounds = array<i64: 8, 128>}]} {
    %c0 = arith.constant 0 : index
    %c0_0 = arith.constant 0 : index
    %0 = vector.load %arg1[%c0, %c0_0] : memref<8x8xf32, #tpu.memory_space<vmem>>, vector<8x8xf32>
    %c0_1 = arith.constant 0 : index
    %c0_2 = arith.constant 0 : index
    %1 = vector.load %arg2[%c0_1, %c0_2] : memref<8x384xf32, #tpu.memory_space<vmem>>, vector<8x384xf32>
    %cst = arith.constant dense<0.000000e+00> : vector<8x384xf32>
    %2 = tpu.matmul %0, %1, %cst {dimension_numbers = #tpu.dot_dimension_numbers<[1], [0], [0], [1], [0, 0, 1, 1], [], []>} : vector<8x8xf32>, vector<8x384xf32>, vector<8x384xf32> -> vector<8x384xf32>
    %c0_3 = arith.constant 0 : index
    %c0_4 = arith.constant 0 : index
    %3 = vector.load %arg3[%c0_3, %c0_4] : memref<1x384xf32, #tpu.memory_space<vmem>>, vector<1x384xf32>
    %4 = vector.broadcast %3 : vector<1x384xf32> to vector<8x384xf32>
    %5 = arith.addf %2, %4 : vector<8x384xf32>
    %cst_5 = arith.constant 0.000000e+00 : f32
    %cst_6 = arith.constant 6.000000e+00 : f32
    %6 = vector.broadcast %cst_5 : f32 to vector<8x384xf32>
    %7 = arith.maximumf %6, %5 : vector<8x384xf32>
    %8 = vector.broadcast %cst_6 : f32 to vector<8x384xf32>
    %9 = arith.minimumf %8, %7 : vector<8x384xf32>
    %c0_7 = arith.constant 0 : index
    %c0_8 = arith.constant 0 : index
    %10 = vector.load %arg4[%c0_7, %c0_8] : memref<384x128xf32, #tpu.memory_space<vmem>>, vector<384x128xf32>
    %cst_9 = arith.constant dense<0.000000e+00> : vector<8x128xf32>
    %11 = tpu.matmul %9, %10, %cst_9 {dimension_numbers = #tpu.dot_dimension_numbers<[1], [0], [0], [1], [0, 0, 1, 1], [], []>} : vector<8x384xf32>, vector<384x128xf32>, vector<8x128xf32> -> vector<8x128xf32>
    %c0_10 = arith.constant 0 : index
    %c0_11 = arith.constant 0 : index
    %12 = vector.load %arg5[%c0_10, %c0_11] : memref<1x128xf32, #tpu.memory_space<vmem>>, vector<1x128xf32>
    %13 = vector.broadcast %12 : vector<1x128xf32> to vector<8x128xf32>
    %14 = arith.addf %11, %13 : vector<8x128xf32>
    %15 = tpu.iota {dimensions = array<i32: 1>} : vector<8x128xi32>
    %16 = math.tanh %14 : vector<8x128xf32>
    %cst_12 = arith.constant 2.000000e+00 : f32
    %17 = vector.broadcast %cst_12 : f32 to vector<8x128xf32>
    %18 = arith.mulf %17, %16 : vector<8x128xf32>
    %cst_13 = arith.constant 0.000000e+00 : f32
    %19 = vector.broadcast %cst_13 : f32 to vector<8x128xf32>
    %20 = arith.maximumf %19, %14 : vector<8x128xf32>
    %21 = vector.broadcast %cst_13 : f32 to vector<8x128xf32>
    %22 = arith.subf %21, %14 : vector<8x128xf32>
    %23 = arith.cmpf one, %22, %22 : vector<8x128xf32>
    %24 = vector.broadcast %cst_13 : f32 to vector<8x128xf32>
    %25 = arith.addf %24, %14 : vector<8x128xf32>
    %26 = math.absf %22 : vector<8x128xf32>
    %cst_14 = arith.constant 0.000000e+00 : f32
    %27 = vector.broadcast %cst_14 : f32 to vector<8x128xf32>
    %28 = arith.subf %27, %26 : vector<8x128xf32>
    %29 = math.exp %28 : vector<8x128xf32>
    %30 = math.log1p %29 : vector<8x128xf32>
    %31 = arith.addf %20, %30 : vector<8x128xf32>
    %32 = arith.select %23, %25, %31 : vector<8x128xi1>, vector<8x128xf32>
    %cst_15 = arith.constant 1.000000e-03 : f32
    %33 = vector.broadcast %cst_15 : f32 to vector<8x128xf32>
    %34 = arith.addf %32, %33 : vector<8x128xf32>
    %c1_i32 = arith.constant 1 : i32
    %35 = vector.broadcast %c1_i32 : i32 to vector<8x128xi32>
    %36 = arith.cmpi slt, %15, %35 : vector<8x128xi32>
    %c2_i32 = arith.constant 2 : i32
    %37 = vector.broadcast %c2_i32 : i32 to vector<8x128xi32>
    %38 = arith.cmpi slt, %15, %37 : vector<8x128xi32>
    %39 = arith.select %38, %34, %14 : vector<8x128xi1>, vector<8x128xf32>
    %40 = arith.select %36, %18, %39 : vector<8x128xi1>, vector<8x128xf32>
    %c0_16 = arith.constant 0 : index
    %c0_17 = arith.constant 0 : index
    %41 = vector.load %arg6[%c0_16, %c0_17] : memref<8x128xf32, #tpu.memory_space<vmem>>, vector<8x128xf32>
    tpu.vector_store %arg6[%c0_16, %c0_17], %40 {strides = array<i32>} : memref<8x128xf32, #tpu.memory_space<vmem>>, vector<8x128xf32>,
    return
  }
  func.func @transform_0(%arg0: i32) -> (i32, i32) {
    %c0_i32 = arith.constant 0 : i32
    %c0_i32_0 = arith.constant 0 : i32
    return %arg0, %c0_i32 : i32, i32
  }
  func.func @transform_1(%arg0: i32) -> (i32, i32) {
    %c0_i32 = arith.constant 0 : i32
    %c0_i32_0 = arith.constant 0 : i32
    %c0_i32_1 = arith.constant 0 : i32
    return %c0_i32, %c0_i32_0 : i32, i32
  }
  func.func @transform_2(%arg0: i32) -> (i32, i32) {
    %c0_i32 = arith.constant 0 : i32
    %c0_i32_0 = arith.constant 0 : i32
    %c0_i32_1 = arith.constant 0 : i32
    return %c0_i32, %c0_i32_0 : i32, i32
  }
  func.func @transform_3(%arg0: i32) -> (i32, i32) {
    %c0_i32 = arith.constant 0 : i32
    %c0_i32_0 = arith.constant 0 : i32
    %c0_i32_1 = arith.constant 0 : i32
    return %c0_i32, %c0_i32_0 : i32, i32
  }
  func.func @transform_4(%arg0: i32) -> (i32, i32) {
    %c0_i32 = arith.constant 0 : i32
    %c0_i32_0 = arith.constant 0 : i32
    %c0_i32_1 = arith.constant 0 : i32
    return %c0_i32, %c0_i32_0 : i32, i32
  }
  func.func @transform_5(%arg0: i32) -> (i32, i32) {
    %c0_i32 = arith.constant 0 : i32
    %c0_i32_0 = arith.constant 0 : i32
    return %arg0, %c0_i32 : i32, i32
  }
}

</mosaic_0001>

<bundles_post_ra>
// kernel: tpu_custom_call.1
= control target key start
LH: loop header
LB: loop body
LE: loop exit
PB: predicated region body
PF: predicated region fallthrough
CT: control target
= control target key end

     0   :  { %10 = vsyncpa [#allocation3], 0  ;;  %s835_s0 = inlined_call_operand.hbm [shape: f32[8,8], index: 0, kind: input, shape index: {}]   ;;  %s836_s1 = inlined_call_operand.hbm [shape: f32[8,384], index: 1, kind: input, shape index: {}]   ;;  %s837_s2 = inlined_call_operand.vmem [shape: f32[1,384], index: 2, kind: input, shape index: {}]   ;;  %s838_s3 = inlined_call_operand.hbm [shape: f32[384,128], index: 3, kind: input, shape index: {}]   ;;  %s839_s4 = inlined_call_operand.vmem [shape: f32[1,128], index: 4, kind: input, shape index: {}]   ;;  %s840_s5 = inlined_call_operand.hbm [shape: f32[8,128], index: 5, kind: output, shape index: {}]  }
   0x1   :  { %11 = vsyncpa [#allocation6], 0 }
   0x2   :  { %12 = vsyncpa [#allocation4], 0  ;;  %s732_s18 = smov [#allocation5]   ;;  %s733_s20 = smov [#allocation2]  }
   0x3   :  { %s29_s19 = sshll.u32 %s732_s18, 4  ;;  %s19_s21 = sshll.u32 %s733_s20, 4  ;;  %s30_s19 = int_to_ptr.vmem [resolvable:$true] %s29_s19  ;;  %s20_s21 = int_to_ptr.vmem [resolvable:$true] %s19_s21 }
   0x4   :  { %s638_s24 = scalar_lea.hbm %s836_s1, 384 }
   0x5   :  { %p639_p0 = scmp.ne.s32.totalorder %s836_s1, %s638_s24  ;;  %p642_p1 = scmp.lt.u32.totalorder %s638_s24, %s836_s1 }
   0x7   :  { %p644_p2 = pnand %p642_p1, %p639_p0 }
   0x9   :  { %647 = shalt.err (!%p644_p2)
}
   0xa   :  { %s648_s29 = scalar_lea.vmem %s30_s19, 384  ;;  %p653_p4 = scmp.lt.s32.totalorder %s30_s19, %s30_s19 }
   0xb   :  { %p649_p3 = scmp.ne.s32.totalorder %s30_s19, %s648_s29  ;;  %p654_p5 = scmp.lt.s32.totalorder %s648_s29, %s648_s29 }
   0xd   :  { %p655_p6 = por %p654_p5, %p653_p4 }
   0xf   :  { %p656_p7 = pnand %p655_p6, %p649_p3 }
  0x11   :  { %659 = shalt.err (!%p656_p7)
}
  0x12   :  { %32 = dma.hbm_to_vmem [thread:$0]  %s836_s1, 384, %s30_s19, [#allocation6]  }
  0x13   :  { %s660_s9 = scalar_lea.hbm %s835_s0, 128 }
  0x14   :  { %p661_p8 = scmp.ne.s32.totalorder %s835_s0, %s660_s9  ;;  %p664_p9 = scmp.lt.u32.totalorder %s660_s9, %s835_s0 }
  0x16   :  { %p666_p10 = pnand %p664_p9, %p661_p8 }
  0x18   :  { %669 = shalt.err (!%p666_p10)
}
  0x19   :  { %s670_s14 = scalar_lea.vmem %s20_s21, 128  ;;  %p675_p12 = scmp.lt.s32.totalorder %s20_s21, %s20_s21 }
  0x1a   :  { %p671_p11 = scmp.ne.s32.totalorder %s20_s21, %s670_s14  ;;  %p676_p13 = scmp.lt.s32.totalorder %s670_s14, %s670_s14 }
  0x1c   :  { %p677_p0 = por %p676_p13, %p675_p12 }
  0x1e   :  { %p678_p1 = pnand %p677_p0, %p671_p11 }
  0x20   :  { %681 = shalt.err (!%p678_p1)
}
  0x21   :  { %22 = dma.hbm_to_vmem [thread:$0]  %s835_s0, 128, %s20_s21, [#allocation3]  }
  0x22   :  { %s734_s16 = smov [#allocation7]   ;;  %s682_s20 = scalar_lea.hbm %s838_s3, 6144 }
  0x23   :  { %s40_s17 = sshll.u32 %s734_s16, 4  ;;  %p683_p2 = scmp.ne.s32.totalorder %s838_s3, %s682_s20  ;;  %s41_s17 = int_to_ptr.vmem [resolvable:$true] %s40_s17 }
  0x24   :  { %p686_p3 = scmp.lt.u32.totalorder %s682_s20, %s838_s3 }
  0x26   :  { %p688_p4 = pnand %p686_p3, %p683_p2 }
  0x28   :  { %691 = shalt.err (!%p688_p4)
}
  0x29   :  { %s692_s26 = scalar_lea.vmem %s41_s17, 6144  ;;  %p697_p6 = scmp.lt.s32.totalorder %s41_s17, %s41_s17 }
  0x2a   :  { %p693_p5 = scmp.ne.s32.totalorder %s41_s17, %s692_s26  ;;  %p698_p7 = scmp.lt.s32.totalorder %s692_s26, %s692_s26 }
  0x2c   :  { %p699_p8 = por %p698_p7, %p697_p6 }
  0x2e   :  { %p700_p9 = pnand %p699_p8, %p693_p5 }
  0x30   :  { %703 = shalt.err (!%p700_p9)
}
  0x31   :  { %s735_s0 = smov 128   ;;  %s736_s21 = smov 8  }
  0x32   :  { %46 = dma.hbm_to_vmem [thread:$0]  %s838_s3, 6144, %s41_s17, [#allocation6], %s735_s0, %s735_s0, %s736_s21  }
  0x33   :  { %726 = dma.done.wait [#allocation3], 128  }
  0x34   :  { %727 = vsyncadd [#allocation3], 4294967168 }
  0x35   :  { %728 = dma.done.wait [#allocation6], 6528  }
  0x36   :  { %729 = vsyncadd [#allocation6], 4294960768  ;;  %v737_v0 = vmov 0.0   ;;  %vm738_vm0 = vmmov 0   ;;  %v60_v1 = vld [vmem:[#allocation5 + $0x8] sm:$0xff]  ;;  %v59_v2 = vld [vmem:[#allocation5] sm:$0xff] }
  0x37   :  { %147 = vmatprep.mubr.f32.mxu0 %v737_v0  ;;  %527 = vmatprep.subr.mxu1 %v737_v0  ;;  %v58_v3 = vld [vmem:[#allocation2] sm:$0xff]  ;;  %vm79_vm1 = vcmask 64512   ;;  %v61_v4 = vld [vmem:[#allocation5 + $0x10] sm:$0xff]  ;;  %v247_v6 = vld [vmem:[#allocation7 + $0x88] sm:$0xff]  ;;  %v739_v16 = vmov 0.0|0.0  }
  0x38   :  { %529 = vmatprep.mubr.msk.f32.mxu1 %vm738_vm0, %v737_v0  ;;  %83 = vmatprep.subr.mxu0 %v60_v1  ;;  %v246_v5 = vld [vmem:[#allocation7 + $0x80] sm:$0xff]  ;;  %v231_v9 = vld [vmem:[#allocation7 + $0x8] sm:$0xff]  ;;  %v248_v10 = vld [vmem:[#allocation7 + $0x90] sm:$0xff] }
  0x39   :  { %84 = vmatpush1.msra.mxu0 %v59_v2  ;;  %528 = vmatpush3.msra.mxu1 %v61_v4  ;;  %v567_v7 = vpack.c.bf16 %v247_v6, %v246_v5  ;;  %v230_v8 = vld [vmem:[#allocation7] sm:$0xff]  ;;  %v249_v12 = vld [vmem:[#allocation7 + $0x98] sm:$0xff]  ;;  %v232_v13 = vld [vmem:[#allocation7 + $0x10] sm:$0xff] }
  0x3a   :  { %470 = vmatmul.mubr.msk.f32.vlgmr.msra.gmra.mrb[0].mxu0 %vm79_vm1, %v58_v3  ;;  %530 = vmatmul.mubr.msk.f32.vlgmr.msra.gmra.mrb[0].mxu1 %vm79_vm1, %v58_v3  ;;  %v569_v11 = vpack.c.bf16 %v231_v9, %v230_v8  ;;  %v233_v14 = vld [vmem:[#allocation7 + $0x18] sm:$0xff]  ;;  %v571_v15 = vpack.c.bf16 %v249_v12, %v248_v10  ;;  %v262_v17 = vld [vmem:[#allocation7 + $0x100] sm:$0xff]  ;;  %v263_v18 = vld [vmem:[#allocation7 + $0x108] sm:$0xff] }
  0x3b   :  { %568 = vmatprep.subr.bf16.mxu0 %v567_v7  ;;  %599 = vmatprep.subr.bf16.mxu1 %v739_v16  ;;  %v250_v19 = vld [vmem:[#allocation7 + $0xa0] sm:$0xff]  ;;  %v573_v20 = vpack.c.bf16 %v233_v14, %v232_v13  ;;  %v600_v21 = vpack.c.bf16 %v263_v18, %v262_v17  ;;  %v251_v22 = vld [vmem:[#allocation7 + $0xa8] sm:$0xff]  ;;  %v264_v26 = vld [vmem:[#allocation7 + $0x110] sm:$0xff]  ;;  %v64_v14 = vlaneseq }
  0x3c   :  { %570 = vmatpush3.bf16.msra.mxu0 %v569_v11  ;;  %v234_v23 = vld [vmem:[#allocation7 + $0x20] sm:$0xff]  ;;  %564 = vmatprep.mubr.msk.f32.mxu1 %vm738_vm0, %v737_v0  ;;  %v575_v24 = vpack.c.bf16 %v251_v22, %v250_v19  ;;  %v235_v25 = vld [vmem:[#allocation7 + $0x28] sm:$0xff]  ;;  %v265_v27 = vld [vmem:[#allocation7 + $0x118] sm:$0xff] }
  0x3d   :  { %572 = vmatprep.subr.bf16.mxu0 %v571_v15  ;;  %601 = vmatpush3.bf16.msra.mxu1 %v600_v21  ;;  %v603_v28 = vpack.c.bf16 %v265_v27, %v264_v26  ;;  %v252_v29 = vld [vmem:[#allocation7 + $0xb0] sm:$0xff]  ;;  %v253_v30 = vld [vmem:[#allocation7 + $0xb8] sm:$0xff]  ;;  %v266_v31 = vld [vmem:[#allocation7 + $0x120] sm:$0xff]  ;;  %v577_v33 = vpack.c.bf16 %v235_v25, %v234_v23  ;;  %v65_v15 = vshrl.u32 %v64_v14, 7 }
  0x3e   :  { %602 = vmatprep.subr.bf16.mxu1 %v739_v16  ;;  %v267_v32 = vld [vmem:[#allocation7 + $0x128] sm:$0xff]  ;;  %v579_v34 = vpack.c.bf16 %v253_v30, %v252_v29  ;;  %v236_v35 = vld [vmem:[#allocation7 + $0x30] sm:$0xff]  ;;  %v237_v36 = vld [vmem:[#allocation7 + $0x38] sm:$0xff] }
  0x3f   :  { %v606_v37 = vpack.c.bf16 %v267_v32, %v266_v31  ;;  %v254_v38 = vld [vmem:[#allocation7 + $0xc0] sm:$0xff]  ;;  %v255_v39 = vld [vmem:[#allocation7 + $0xc8] sm:$0xff]  ;;  %v268_v40 = vld [vmem:[#allocation7 + $0x130] sm:$0xff]  ;;  %v581_v42 = vpack.c.bf16 %v237_v36, %v236_v35  ;;  %v66_v17 = vsub.s32 0, %v65_v15  ;;  %v74_v18 = vsub.s32 2, %v65_v15 }
  0x40   :  { %574 = vmatpush3.bf16.msra.mxu0 %v573_v20  ;;  %v269_v41 = vld [vmem:[#allocation7 + $0x138] sm:$0xff]  ;;  %v583_v43 = vpack.c.bf16 %v255_v39, %v254_v38  ;;  %v238_v44 = vld [vmem:[#allocation7 + $0x40] sm:$0xff]  ;;  %v239_v45 = vld [vmem:[#allocation7 + $0x48] sm:$0xff]  ;;  %v70_v20 = vsub.s32 1, %v65_v15 }
  0x41   :  { %576 = vmatprep.subr.bf16.mxu0 %v575_v24  ;;  %604 = vmatpush3.bf16.msra.mxu1 %v603_v28  ;;  %v609_v46 = vpack.c.bf16 %v269_v41, %v268_v40  ;;  %v256_v47 = vld [vmem:[#allocation7 + $0xd0] sm:$0xff]  ;;  %v257_v48 = vld [vmem:[#allocation7 + $0xd8] sm:$0xff]  ;;  %v270_v49 = vld [vmem:[#allocation7 + $0x140] sm:$0xff]  ;;  %v585_v51 = vpack.c.bf16 %v239_v45, %v238_v44 }
  0x42   :  { %605 = vmatprep.subr.bf16.mxu1 %v739_v16  ;;  %v271_v50 = vld [vmem:[#allocation7 + $0x148] sm:$0xff]  ;;  %v587_v52 = vpack.c.bf16 %v257_v48, %v256_v47  ;;  %v240_v53 = vld [vmem:[#allocation7 + $0x50] sm:$0xff]  ;;  %v241_v54 = vld [vmem:[#allocation7 + $0x58] sm:$0xff] }
  0x43   :  { %v612_v55 = vpack.c.bf16 %v271_v50, %v270_v49  ;;  %v589_v56 = vpack.c.bf16 %v241_v54, %v240_v53  ;;  %v258_v57 = vld [vmem:[#allocation7 + $0xe0] sm:$0xff]  ;;  %v259_v58 = vld [vmem:[#allocation7 + $0xe8] sm:$0xff]  ;;  %v272_v62 = vld [vmem:[#allocation7 + $0x150] sm:$0xff] }
  0x44   :  { %578 = vmatpush3.bf16.msra.mxu0 %v577_v33  ;;  %v591_v59 = vpack.c.bf16 %v259_v58, %v258_v57  ;;  %v242_v60 = vld [vmem:[#allocation7 + $0x60] sm:$0xff]  ;;  %v243_v61 = vld [vmem:[#allocation7 + $0x68] sm:$0xff]  ;;  %v273_v0 = vld [vmem:[#allocation7 + $0x158] sm:$0xff]  ;;  %v426_v57 = vand.u32 127, %v64_v14 }
  0x45   :  { %580 = vmatprep.subr.bf16.mxu0 %v579_v34  ;;  %607 = vmatpush3.bf16.msra.mxu1 %v606_v37  ;;  %v593_v63 = vpack.c.bf16 %v243_v61, %v242_v60  ;;  %v615_v1 = vpack.c.bf16 %v273_v0, %v272_v62  ;;  %v260_v2 = vld [vmem:[#allocation7 + $0xf0] sm:$0xff]  ;;  %v261_v3 = vld [vmem:[#allocation7 + $0xf8] sm:$0xff]  ;;  %v274_v7 = vld [vmem:[#allocation7 + $0x160] sm:$0xff] }
  0x46   :  { %608 = vmatprep.subr.bf16.mxu1 %v739_v16  ;;  %v595_v4 = vpack.c.bf16 %v261_v3, %v260_v2  ;;  %v244_v5 = vld [vmem:[#allocation7 + $0x70] sm:$0xff]  ;;  %v245_v6 = vld [vmem:[#allocation7 + $0x78] sm:$0xff]  ;;  %v275_v9 = vld [vmem:[#allocation7 + $0x168] sm:$0xff]  ;;  %vm450_vm4 = vcmp.lt.s32.totalorder %v426_v57, 2  ;;  %vm449_vm5 = vcmp.lt.s32.totalorder %v426_v57, 1 }
  0x47   :  { %v597_v8 = vpack.c.bf16 %v245_v6, %v244_v5  ;;  %v618_v10 = vpack.c.bf16 %v275_v9, %v274_v7  ;;  %v276_v11 = vld [vmem:[#allocation7 + $0x170] sm:$0xff]  ;;  %v277_v12 = vld [vmem:[#allocation7 + $0x178] sm:$0xff]  ;;  %v62_v19 = vld [vmem:[%s837_s2] sm:$0x7] }
  0x48   :  { %582 = vmatpush3.bf16.msra.mxu0 %v581_v42  ;;  %v621_v13 = vpack.c.bf16 %v277_v12, %v276_v11  ;;  %v67_v21 = vrot.slane %v62_v19, %v66_v17  ;;  %v75_v22 = vrot.slane %v62_v19, %v74_v18  ;;  %v71_v23 = vrot.slane %v62_v19, %v70_v20  ;;  %v472_v40 = vld [vmem:[%s839_s4] ss:$0 sm:$0xff]  ;;  %s740_s4 = smov [#allocation8]  }
  0x49   :  { %584 = vmatprep.subr.bf16.mxu0 %v583_v43  ;;  %610 = vmatpush3.bf16.msra.mxu1 %v609_v46  ;;  %s460_s6 = sshll.u32 %s740_s4, 4  ;;  %s461_s6 = int_to_ptr.vmem [resolvable:$true] %s460_s6 }
  0x4a   :  { %611 = vmatprep.subr.bf16.mxu1 %v739_v16  ;;  %s704_s7 = scalar_lea.vmem %s461_s6, 128  ;;  %p709_p11 = scmp.lt.s32.totalorder %s461_s6, %s461_s6 }
  0x4b   :  { %p705_p10 = scmp.ne.s32.totalorder %s461_s6, %s704_s7  ;;  %p710_p12 = scmp.lt.s32.totalorder %s704_s7, %s704_s7 }
  0x4c   :  { %586 = vmatpush3.bf16.msra.mxu0 %v585_v51 }
  0x4d   :  { %588 = vmatprep.subr.bf16.mxu0 %v587_v52  ;;  %613 = vmatpush3.bf16.msra.mxu1 %v612_v55  ;;  %p711_p13 = por %p710_p12, %p709_p11 }
  0x4e   :  { %614 = vmatprep.subr.bf16.mxu1 %v739_v16 }
  0x4f   :  { %p712_p0 = pnand %p711_p13, %p705_p10 }
  0x50   :  { %590 = vmatpush3.bf16.msra.mxu0 %v589_v56 }
  0x51   :  { %592 = vmatprep.subr.bf16.mxu0 %v591_v59  ;;  %616 = vmatpush3.bf16.msra.mxu1 %v615_v1 }
  0x52   :  { %617 = vmatprep.subr.bf16.mxu1 %v739_v16 }
  0x54   :  { %594 = vmatpush3.bf16.msra.mxu0 %v593_v63 }
  0x55   :  { %596 = vmatprep.subr.bf16.mxu0 %v595_v4  ;;  %619 = vmatpush3.bf16.msra.mxu1 %v618_v10 }
  0x56   :  { %620 = vmatprep.subr.bf16.mxu1 %v739_v16 }
  0x58   :  { %598 = vmatpush3.bf16.msra.mxu0 %v597_v8 }
  0x59   :  { %622 = vmatpush3.bf16.msra.mxu1 %v621_v13 }
 0x10d   :  { %v149_v24 = vpop.f32.mrb[0].mxu0  ;;  %v220_v25 = vpop.f32.mrb[0].mxu1 }
 0x10e   :  { %v150_v26 = vadd.f32 %v149_v24, %v67_v21  ;;  %v151_v27 = vpop.f32.mrb[1].mxu0  ;;  %v221_v28 = vadd.f32 %v220_v25, %v75_v22  ;;  %v531_v16 = vpop.f32.mrb[1].mxu1 }
 0x10f   :  { %v152_v29 = vadd.f32 %v151_v27, %v71_v23 }
 0x110   :  { %v224_v30 = vmax.f32 %v150_v26, 0.0  ;;  %v226_v31 = vmax.f32 %v221_v28, 0.0 }
 0x111   :  { %v225_v32 = vmax.f32 %v152_v29, 0.0 }
 0x112   :  { %v229_v33 = vmin.f32 %v226_v31, 6.0  ;;  %v227_v35 = vmin.f32 %v224_v30, 6.0 }
 0x113   :  { %v228_v34 = vmin.f32 %v225_v32, 6.0 }
 0x114   :  { %565 = vmatmul.mubr.f32.vlgmr.msra.gmra.mrb[2].mxu1 %v229_v33 }
 0x115   :  { %349 = vmatprep.mubr.f32.mxu0 %v228_v34 }
 0x116   :  { %350 = vmatmul.mubr.f32.vlgmr.msra.gmra.mrb[2].mxu0 %v227_v35 }
 0x1e7   :  { %v421_v36 = vpop.f32.mrb[2].mxu1 }
 0x1e8   :  { %v566_v37 = vpop.f32.mrb[3].mxu1 }
 0x1e9   :  { %v507_v38 = vpop.f32.mrb[2].mxu0 }
 0x1ea   :  { %v508_v39 = vpop.f32.mrb[3].mxu0 }
 0x1eb   :  { %v509_v41 = vadd.f32 %v508_v39, %v507_v38 }
 0x1ed   :  { %v352_v42 = vadd.f32 %v509_v41, %v472_v40 }
 0x1ef   :  { %v422_v43 = vadd.f32 %v421_v36, %v352_v42 }
 0x1f1   :  { %v430_v44 = vsub.f32 0.0, %v422_v43  ;;  %v429_v56 = vmax.f32 %v422_v43, 0.0 }
 0x1f3   :  { %v433_v45 = vand.u32 2147483647, %v430_v44  ;;  %vm431_vm3 = vcmp.ne.f32.partialorder %v430_v44, %v430_v44 }
 0x1f5   :  { %v434_v46 = vsub.f32 0.0, %v433_v45 }
 0x1f7   :  { %v435_v47 = vmul.f32 1.442695, %v434_v46 }
 0x1f9   :  { %632 = vpow2.f32 %v435_v47 }
 0x203   :  { %v633_v48 = vpop.eup %632 }
 0x204   :  { %v437_v49 = vadd.f32 1.0, %v633_v48  ;;  %v440_v50 = vmul.f32 -0.5, %v633_v48  ;;  %v443_v52 = vand.u32 2147483647, %v633_v48 }
 0x206   :  { %634 = vlog2.f32 %v437_v49  ;;  %v441_v51 = vadd.f32 1.0, %v440_v50  ;;  %vm444_vm2 = vcmp.lt.f32.partialorder %v443_v52, 0.0004427343 }
 0x207   :  { %636 = vtanh.f32 %v422_v43 }
 0x208   :  { %v442_v55 = vmul.f32 %v633_v48, %v441_v51 }
 0x210   :  { %v635_v53 = vpop.eup %634 }
 0x211   :  { %v439_v54 = vmul.f32 0.6931472, %v635_v53  ;;  %v637_v60 = vpop.eup %636 }
 0x212   :  { %v428_v63 = vmul.f32 2.0, %v637_v60 }
 0x213   :  { %v445_v58 = vsel %vm444_vm2, %v442_v55, %v439_v54 }
 0x214   :  { %v446_v59 = vadd.f32 %v445_v58, %v429_v56 }
 0x216   :  { %v447_v61 = vsel %vm431_vm3, %v422_v43, %v446_v59 }
 0x217   :  { %v448_v62 = vadd.f32 0.001, %v447_v61 }
 0x219   :  { %v451_v0 = vsel %vm450_vm4, %v448_v62, %v422_v43 }
 0x21a   :  { %v452_v1 = vsel %vm449_vm5, %v428_v63, %v451_v0 }
 0x21b   :  { %453 = vst [vmem:[#allocation8] sm:$0xff] %v452_v1 }
 0x21c   :  { %715 = shalt.err (!%p712_p0)
}
 0x21d   :  { %s716_s10 = scalar_lea.hbm %s840_s5, 128 }
 0x21e   :  { %p717_p1 = scmp.ne.s32.totalorder %s840_s5, %s716_s10  ;;  %p720_p2 = scmp.lt.u32.totalorder %s716_s10, %s840_s5 }
 0x220   :  { %p722_p3 = pnand %p720_p2, %p717_p1 }
 0x222   :  { %725 = shalt.err (!%p722_p3)
}
 0x223   :  { %463 = dma.vmem_to_hbm [thread:$0]  %s461_s6, 128, %s840_s5, [#allocation4]  }
 0x224   :  { %730 = dma.done.wait [#allocation4], 128  }
 0x225   :  { %731 = vsyncadd [#allocation4], 4294967168 }
 0x226   :  { %467 = vsyncpa [#allocation3], 1 }
 0x227   :  { %468 = vsyncpa [#allocation6], 1 }
 0x228   :  { %469 = vsyncpa [#allocation4], 1 }

</bundles_post_ra>
